<compile_context>
chip_gen: v7x
topology: tpu7x:2x2x1
jax: 0.10.0
libtpu: 0.0.40
codegen_flags: <defaults>
</compile_context>

<pallas_src>
import functools

import jax
import jax.numpy as jnp
from jax.experimental import pallas as pl
from jax.experimental.pallas import tpu as pltpu

_LANES = 128


def _round_up(a, m):
    return (a + m - 1) // m * m


def _cdiv(a, b):
    return -(-a // b)


# ---------------------------------------------------------------------------
# Pallas kernel
# ---------------------------------------------------------------------------
def _att_fc_v3_kernel(x_ref, rhs1_ref, rhs2_ref, o_ref, lhs_ref, *,
                      degree, knots, outd, act, islastlayer):
    """One batch tile.

    x_ref    : (TB, 1+ind)  f32   raw input (lane 0 = treatment)
    rhs1_ref : (KP, 128)    mm    packed [zero-row(t) | W | bias], k-major columns
    rhs2_ref : (128, 128)   mm    constant 0/1 gather matrix (+ treatment shift)
    o_ref    : (TB, 128)    f32   output slab (lane 0 = t when hidden layer)
    lhs_ref  : (TB, KP)     mm    VMEM staging for the 128-lane-aligned lhs
    """
    x = x_ref[...]                      # (TB, c) f32
    tb, c = x.shape
    kp = lhs_ref.shape[1]
    nlanes = rhs1_ref.shape[1]          # 128
    t = x[:, :1]                        # (TB, 1) f32

    # --- stage the lane-dense matmul-1 lhs: [1 (bias pickup), features, 0-pad]
    # Lane 0 of x is the treatment; it is replaced by the constant 1.0 that
    # picks up the bias row of rhs1 (rhs1 row 0 = flattened bias).
    mm = lhs_ref.dtype
    lhs_ref[...] = jnp.zeros((tb, kp), mm)
    lane_c = jax.lax.broadcasted_iota(jnp.int32, (tb, c), 1)
    lhs_ref[:, :c] = jnp.where(lane_c == 0, 1.0, x).astype(mm)

    # --- matmul 1: y[b, k*outd + o] = bias[o,k] + sum_i xf[b,i] * W[i,o,k]
    y = jnp.dot(lhs_ref[...], rhs1_ref[...], preferred_element_type=jnp.float32)

    # --- truncated-power basis, broadcast onto the k-major lane layout (VPU) ---
    t_full = jnp.broadcast_to(t, (tb, nlanes))
    lane = jax.lax.broadcasted_iota(jnp.int32, (tb, nlanes), 1)
    bb = jnp.ones((tb, nlanes), jnp.float32)          # k = 0 region: basis = 1
    p = jnp.ones((tb, nlanes), jnp.float32)
    k_idx = 1
    for _ in range(degree):                           # k = 1..degree : t^k
        p = p * t_full
        sel = (lane >= k_idx * outd) & (lane < (k_idx + 1) * outd)
        bb = jnp.where(sel, p, bb)
        k_idx += 1
    for knot in knots:                                # relu(t - knot)^degree
        r = jnp.maximum(t_full - knot, 0.0)
        rp = r
        for _ in range(degree - 1):
            rp = rp * r
        sel = (lane >= k_idx * outd) & (lane < (k_idx + 1) * outd)
        bb = jnp.where(sel, rp, bb)
        k_idx += 1

    z = (y * bb).astype(rhs2_ref.dtype)

    # --- matmul 2: gather/sum over k; also applies the treatment-column shift ---
    acc = jnp.dot(z, rhs2_ref[...], preferred_element_type=jnp.float32)

    if act == "relu":
        acc = jnp.maximum(acc, 0.0)
    elif act == "tanh":
        acc = jnp.tanh(acc)
    elif act == "sigmoid":
        acc = jax.nn.sigmoid(acc)

    if not islastlayer:
        # Fused concat([t, out]): rhs2 columns were shifted right by one lane,
        # so simply overwrite lane 0 with the treatment value.
        lane_o = jax.lax.broadcasted_iota(jnp.int32, acc.shape, 1)
        acc = jnp.where(lane_o == 0, jnp.broadcast_to(t, acc.shape), acc)

    o_ref[...] = acc.astype(o_ref.dtype)


# ---------------------------------------------------------------------------
# One-time parameter packing (hoist out of the per-call path)
# ---------------------------------------------------------------------------
def pack_att_fc_v3_params(weight, bias=None, *, islastlayer=0, npad=_LANES):
    """Pack (weight, bias) once into the two constant operands the kernel uses.

    rhs1 (KP, 128), column j = k*outd + o (k-major):
        row 0      -> bias[o, k]   (picked up by the in-kernel '1' on lane 0)
        row 1+i    -> weight[i, o, k]
    rhs2 (128, npad):
        rhs2[k*outd + o, o + col_off] = 1   (col_off = 1 for hidden layers so
        lane 0 of the output slab is reserved for the treatment column).
    """
    ind, outd, d = weight.shape
    nd = outd * d
    col_off = 0 if islastlayer else 1
    assert nd <= _LANES, "outd * d must fit in 128 lanes (outd*d <= 128)"
    assert outd + col_off <= npad, "outd (+ treatment column) must fit in 128 lanes"
    kp = _round_up(ind + 1, _LANES)

    w = jnp.transpose(weight.astype(jnp.float32), (0, 2, 1)).reshape(ind, nd)  # [i, k*outd+o]
    rhs1 = jnp.zeros((kp, _LANES), jnp.float32)
    rhs1 = rhs1.at[1:ind + 1, :nd].set(w)
    if bias is not None:
        b_flat = jnp.transpose(bias.astype(jnp.float32), (1, 0)).reshape(nd)   # [k*outd+o]
        rhs1 = rhs1.at[0, :nd].set(b_flat)

    gather = jnp.tile(jnp.eye(outd, dtype=jnp.float32), (d, 1))                # (d*outd, outd)
    rhs2 = jnp.zeros((_LANES, npad), jnp.float32)
    rhs2 = rhs2.at[:nd, col_off:col_off + outd].set(gather)
    return rhs1, rhs2


# ---------------------------------------------------------------------------
# Forward wrapper
# ---------------------------------------------------------------------------
def att_fc_v3_forward(x, packed, *, outd, degree, knots, act="relu",
                      islastlayer=0, use_bf16=True, block_b=1024):
    """x: (B, 1+ind).  packed: output of pack_att_fc_v3_params (packed at init)."""
    rhs1, rhs2 = packed
    B, c = x.shape
    d = degree + 1 + len(knots)
    kp, nlanes = rhs1.shape
    nlanes2, npad = rhs2.shape
    assert nlanes == nlanes2 == _LANES
    assert kp >= c, "ind + 1 must fit in the packed K"
    assert outd * d <= nlanes

    mm_dtype = jnp.bfloat16 if use_bf16 else jnp.float32
    rhs1 = rhs1.astype(mm_dtype)
    rhs2 = rhs2.astype(mm_dtype)
    x = x.astype(jnp.float32)

    # Balanced batch tiles; force >=2 grid iterations for B > 256 so the
    # "parallel" axis shards across both TensorCores on v7x (cheap elsewhere).
    n_tiles = max(1, _cdiv(B, block_b))
    if B > 256:
        n_tiles = max(n_tiles, 2)
    tb = _round_up(_cdiv(B, n_tiles), 8)
    b_pad = tb * n_tiles
    if b_pad != B:
        x = jnp.pad(x, ((0, b_pad - B), (0, 0)))

    kernel = functools.partial(
        _att_fc_v3_kernel, degree=degree, knots=tuple(knots), outd=outd,
        act=act, islastlayer=islastlayer)

    out_pad = pl.pallas_call(
        kernel,
        out_shape=jax.ShapeDtypeStruct((b_pad, npad), jnp.float32),
        grid=(n_tiles,),
        in_specs=[
            pl.BlockSpec((tb, c), lambda i: (i, 0)),          # raw x, 1+ind lanes
            pl.BlockSpec((kp, nlanes), lambda i: (0, 0)),     # grid-invariant rhs1
            pl.BlockSpec((nlanes, npad), lambda i: (0, 0)),   # grid-invariant rhs2
        ],
        out_specs=pl.BlockSpec((tb, npad), lambda i: (i, 0)),
        scratch_shapes=[pltpu.VMEM((tb, kp), mm_dtype)],
        compiler_params=pltpu.CompilerParams(
            dimension_semantics=("parallel",),
            vmem_limit_bytes=32 * 1024 * 1024,
        ),
    )(x, rhs1, rhs2)

    width = outd if islastlayer else 1 + outd
    return out_pad[:B, :width]


# ---------------------------------------------------------------------------
# Pure-JAX reference
# ---------------------------------------------------------------------------
def truncated_power_basis(t, degree, knots):
    cols = [t ** j for j in range(degree + 1)]
    cols += [jnp.maximum(t - k, 0.0) ** degree for k in knots]
    return jnp.stack(cols, axis=1).astype(jnp.float32)


def att_fc_v3_reference(x, weight, bias, *, degree, knots, act="relu", islastlayer=0):
    hi = jax.lax.Precision.HIGHEST
    x_treat = x[:, 0]
    x_feat = x[:, 1:]
    basis = truncated_power_basis(x_treat, degree, knots)
    xfw = jnp.einsum("bi,iok->bok", x_feat, weight, precision=hi)
    out = jnp.sum(xfw * basis[:, None, :], axis=2)
    out = out + jnp.einsum("ok,bk->bo", bias, basis, precision=hi)
    if act == "relu":
        out = jnp.maximum(out, 0.0)
    elif act == "tanh":
        out = jnp.tanh(out)
    elif act == "sigmoid":
        out = jax.nn.sigmoid(out)
    if not islastlayer:
        out = jnp.concatenate([x_treat[:, None], out], axis=1)
    return out


if __name__ == "__main__":
    B, ind, outd = 8, 32, 16
    degree, knots = 2, (0.33, 0.66)
    d = degree + 1 + len(knots)  # emb_size = 5 ; outd*d = 80 <= 128

    key = jax.random.PRNGKey(0)
    k_x, k_t, k_w, k_b, k_x2, k_t2 = jax.random.split(key, 6)

    x_feat = jax.random.uniform(k_x, (B, ind), dtype=jnp.float32)
    x_treat = jax.random.uniform(k_t, (B,), dtype=jnp.float32)
    x = jnp.concatenate([x_treat[:, None], x_feat], axis=1)              # (B, 1+ind)
    weight = jax.random.uniform(k_w, (ind, outd, d), dtype=jnp.float32)  # torch.rand
    bias = jax.random.uniform(k_b, (outd, d), dtype=jnp.float32)

    packed_hidden = pack_att_fc_v3_params(weight, bias, islastlayer=0)
    packed_last = pack_att_fc_v3_params(weight, bias, islastlayer=1)

    # --- Test 1: f32-exact path, hidden layer (fused treatment concat), relu ---
    out = att_fc_v3_forward(x, packed_hidden, outd=outd, degree=degree, knots=knots,
                            act="relu", islastlayer=0, use_bf16=False)
    out = jax.block_until_ready(out)
    ref = att_fc_v3_reference(x, weight, bias, degree=degree, knots=knots,
                              act="relu", islastlayer=0)
    assert out.shape == (B, 1 + outd)
    assert jnp.allclose(out, ref, atol=1e-3, rtol=1e-3), "f32 hidden-layer mismatch"

    # --- Test 2: default bf16 MXU operands (f32 accumulation), hidden layer ---
    out_bf16 = att_fc_v3_forward(x, packed_hidden, outd=outd, degree=degree,
                                 knots=knots, act="relu", islastlayer=0)
    out_bf16 = jax.block_until_ready(out_bf16)
    assert jnp.allclose(out_bf16, ref, atol=2.5e-1, rtol=3e-2), "bf16 path mismatch"

    # --- Test 3: larger batch (multi-tile grid + tail padding), last layer, sigmoid ---
    B2 = 600
    xf2 = jax.random.uniform(k_x2, (B2, ind), dtype=jnp.float32)
    xt2 = jax.random.uniform(k_t2, (B2,), dtype=jnp.float32)
    x2 = jnp.concatenate([xt2[:, None], xf2], axis=1)
    out2 = att_fc_v3_forward(x2, packed_last, outd=outd, degree=degree, knots=knots,
                             act="sigmoid", islastlayer=1)
    out2 = jax.block_until_ready(out2)
    ref2 = att_fc_v3_reference(x2, weight, bias, degree=degree, knots=knots,
                               act="sigmoid", islastlayer=1)
    assert out2.shape == (B2, outd)
    assert jnp.allclose(out2, ref2, atol=5e-2, rtol=5e-2), "large-batch mismatch"

    print("KERNEL_OK")
</pallas_src>

<mosaic_0001>
module attributes {stable_mosaic.version = 11 : i64} {
  func.func @_att_fc_v3_kernel(%arg0: i32, %arg1: memref<8x33xf32, #tpu.memory_space<vmem>>, %arg2: memref<128x128xf32, #tpu.memory_space<vmem>>, %arg3: memref<128x128xf32, #tpu.memory_space<vmem>>, %arg4: memref<8x128xf32, #tpu.memory_space<vmem>>, %arg5: memref<8x128xf32, #tpu.memory_space<vmem>>) attributes {dimension_semantics = [#tpu.dimension_semantics<parallel>], iteration_bounds = array<i64: 1>, scalar_prefetch = 0 : i64, scratch_operands = 1 : i64, tpu.core_type = #tpu.core_type<tc>, window_params = [{transform_indices = @transform_0, window_bounds = array<i64: 8, 33>}, {pipeline_mode = #tpu.pipeline_mode<synchronous>, transform_indices = @transform_1, window_bounds = array<i64: 128, 128>}, {pipeline_mode = #tpu.pipeline_mode<synchronous>, transform_indices = @transform_2, window_bounds = array<i64: 128, 128>}, {transform_indices = @transform_3, window_bounds = array<i64: 8, 128>}]} {
    %c0 = arith.constant 0 : index
    %c0_0 = arith.constant 0 : index
    %0 = vector.load %arg1[%c0, %c0_0] : memref<8x33xf32, #tpu.memory_space<vmem>>, vector<8x33xf32>
    %1 = vector.extract_strided_slice %0 {offsets = [0, 0], sizes = [8, 1], strides = [1, 1]} : vector<8x33xf32> to vector<8x1xf32>
    %cst = arith.constant 0.000000e+00 : f32
    %2 = vector.broadcast %cst : f32 to vector<8x128xf32>
    %c0_1 = arith.constant 0 : index
    %c0_2 = arith.constant 0 : index
    %3 = vector.load %arg5[%c0_1, %c0_2] : memref<8x128xf32, #tpu.memory_space<vmem>>, vector<8x128xf32>
    tpu.vector_store %arg5[%c0_1, %c0_2], %2 {strides = array<i32>} : memref<8x128xf32, #tpu.memory_space<vmem>>, vector<8x128xf32>,
    %4 = tpu.iota {dimensions = array<i32: 1>} : vector<8x33xi32>
    %c0_i32 = arith.constant 0 : i32
    %5 = vector.broadcast %c0_i32 : i32 to vector<8x33xi32>
    %6 = arith.cmpi eq, %4, %5 : vector<8x33xi32>
    %cst_3 = arith.constant 1.000000e+00 : f32
    %7 = vector.broadcast %cst_3 : f32 to vector<8x33xf32>
    %8 = arith.select %6, %7, %0 : vector<8x33xi1>, vector<8x33xf32>
    %c0_4 = arith.constant 0 : index
    %c0_5 = arith.constant 0 : index
    %9 = vector.load %arg5[%c0_4, %c0_5] : memref<8x128xf32, #tpu.memory_space<vmem>>, vector<8x33xf32>
    tpu.vector_store %arg5[%c0_4, %c0_5], %8 {strides = array<i32>} : memref<8x128xf32, #tpu.memory_space<vmem>>, vector<8x33xf32>,
    %c0_6 = arith.constant 0 : index
    %c0_7 = arith.constant 0 : index
    %10 = vector.load %arg5[%c0_6, %c0_7] : memref<8x128xf32, #tpu.memory_space<vmem>>, vector<8x128xf32>
    %c0_8 = arith.constant 0 : index
    %c0_9 = arith.constant 0 : index
    %11 = vector.load %arg2[%c0_8, %c0_9] : memref<128x128xf32, #tpu.memory_space<vmem>>, vector<128x128xf32>
    %cst_10 = arith.constant dense<0.000000e+00> : vector<8x128xf32>
    %12 = tpu.matmul %10, %11, %cst_10 {dimension_numbers = #tpu.dot_dimension_numbers<[1], [0], [0], [1], [0, 0, 1, 1], [], []>} : vector<8x128xf32>, vector<128x128xf32>, vector<8x128xf32> -> vector<8x128xf32>
    %13 = vector.shape_cast %1 : vector<8x1xf32> to vector<8x1xf32>
    %14 = vector.broadcast %13 : vector<8x1xf32> to vector<8x128xf32>
    %15 = tpu.iota {dimensions = array<i32: 1>} : vector<8x128xi32>
    %cst_11 = arith.constant 1.000000e+00 : f32
    %16 = vector.broadcast %cst_11 : f32 to vector<8x128xf32>
    %cst_12 = arith.constant 1.000000e+00 : f32
    %17 = vector.broadcast %cst_12 : f32 to vector<8x128xf32>
    %18 = arith.mulf %17, %14 : vector<8x128xf32>
    %c16_i32 = arith.constant 16 : i32
    %19 = vector.broadcast %c16_i32 : i32 to vector<8x128xi32>
    %20 = arith.cmpi sge, %15, %19 : vector<8x128xi32>
    %c32_i32 = arith.constant 32 : i32
    %21 = vector.broadcast %c32_i32 : i32 to vector<8x128xi32>
    %22 = arith.cmpi slt, %15, %21 : vector<8x128xi32>
    %23 = arith.andi %20, %22 : vector<8x128xi1>
    %24 = arith.select %23, %18, %16 : vector<8x128xi1>, vector<8x128xf32>
    %25 = arith.mulf %18, %14 : vector<8x128xf32>
    %c32_i32_13 = arith.constant 32 : i32
    %26 = vector.broadcast %c32_i32_13 : i32 to vector<8x128xi32>
    %27 = arith.cmpi sge, %15, %26 : vector<8x128xi32>
    %c48_i32 = arith.constant 48 : i32
    %28 = vector.broadcast %c48_i32 : i32 to vector<8x128xi32>
    %29 = arith.cmpi slt, %15, %28 : vector<8x128xi32>
    %30 = arith.andi %27, %29 : vector<8x128xi1>
    %31 = arith.select %30, %25, %24 : vector<8x128xi1>, vector<8x128xf32>
    %cst_14 = arith.constant 3.300000e-01 : f32
    %32 = vector.broadcast %cst_14 : f32 to vector<8x128xf32>
    %33 = arith.subf %14, %32 : vector<8x128xf32>
    %cst_15 = arith.constant 0.000000e+00 : f32
    %34 = vector.broadcast %cst_15 : f32 to vector<8x128xf32>
    %35 = arith.maximumf %33, %34 : vector<8x128xf32>
    %36 = arith.mulf %35, %35 : vector<8x128xf32>
    %c48_i32_16 = arith.constant 48 : i32
    %37 = vector.broadcast %c48_i32_16 : i32 to vector<8x128xi32>
    %38 = arith.cmpi sge, %15, %37 : vector<8x128xi32>
    %c64_i32 = arith.constant 64 : i32
    %39 = vector.broadcast %c64_i32 : i32 to vector<8x128xi32>
    %40 = arith.cmpi slt, %15, %39 : vector<8x128xi32>
    %41 = arith.andi %38, %40 : vector<8x128xi1>
    %42 = arith.select %41, %36, %31 : vector<8x128xi1>, vector<8x128xf32>
    %cst_17 = arith.constant 6.600000e-01 : f32
    %43 = vector.broadcast %cst_17 : f32 to vector<8x128xf32>
    %44 = arith.subf %14, %43 : vector<8x128xf32>
    %cst_18 = arith.constant 0.000000e+00 : f32
    %45 = vector.broadcast %cst_18 : f32 to vector<8x128xf32>
    %46 = arith.maximumf %44, %45 : vector<8x128xf32>
    %47 = arith.mulf %46, %46 : vector<8x128xf32>
    %c64_i32_19 = arith.constant 64 : i32
    %48 = vector.broadcast %c64_i32_19 : i32 to vector<8x128xi32>
    %49 = arith.cmpi sge, %15, %48 : vector<8x128xi32>
    %c80_i32 = arith.constant 80 : i32
    %50 = vector.broadcast %c80_i32 : i32 to vector<8x128xi32>
    %51 = arith.cmpi slt, %15, %50 : vector<8x128xi32>
    %52 = arith.andi %49, %51 : vector<8x128xi1>
    %53 = arith.select %52, %47, %42 : vector<8x128xi1>, vector<8x128xf32>
    %54 = arith.mulf %12, %53 : vector<8x128xf32>
    %c0_20 = arith.constant 0 : index
    %c0_21 = arith.constant 0 : index
    %55 = vector.load %arg3[%c0_20, %c0_21] : memref<128x128xf32, #tpu.memory_space<vmem>>, vector<128x128xf32>
    %cst_22 = arith.constant dense<0.000000e+00> : vector<8x128xf32>
    %56 = tpu.matmul %54, %55, %cst_22 {dimension_numbers = #tpu.dot_dimension_numbers<[1], [0], [0], [1], [0, 0, 1, 1], [], []>} : vector<8x128xf32>, vector<128x128xf32>, vector<8x128xf32> -> vector<8x128xf32>
    %cst_23 = arith.constant 0.000000e+00 : f32
    %57 = vector.broadcast %cst_23 : f32 to vector<8x128xf32>
    %58 = arith.maximumf %56, %57 : vector<8x128xf32>
    %59 = tpu.iota {dimensions = array<i32: 1>} : vector<8x128xi32>
    %c0_i32_24 = arith.constant 0 : i32
    %60 = vector.broadcast %c0_i32_24 : i32 to vector<8x128xi32>
    %61 = arith.cmpi eq, %59, %60 : vector<8x128xi32>
    %62 = vector.shape_cast %1 : vector<8x1xf32> to vector<8x1xf32>
    %63 = vector.broadcast %62 : vector<8x1xf32> to vector<8x128xf32>
    %64 = arith.select %61, %63, %58 : vector<8x128xi1>, vector<8x128xf32>
    %c0_25 = arith.constant 0 : index
    %c0_26 = arith.constant 0 : index
    %65 = vector.load %arg4[%c0_25, %c0_26] : memref<8x128xf32, #tpu.memory_space<vmem>>, vector<8x128xf32>
    tpu.vector_store %arg4[%c0_25, %c0_26], %64 {strides = array<i32>} : memref<8x128xf32, #tpu.memory_space<vmem>>, vector<8x128xf32>,
    return
  }
  func.func @transform_0(%arg0: i32) -> (i32, i32) {
    %c0_i32 = arith.constant 0 : i32
    %c0_i32_0 = arith.constant 0 : i32
    return %arg0, %c0_i32 : i32, i32
  }
  func.func @transform_1(%arg0: i32) -> (i32, i32) {
    %c0_i32 = arith.constant 0 : i32
    %c0_i32_0 = arith.constant 0 : i32
    %c0_i32_1 = arith.constant 0 : i32
    return %c0_i32, %c0_i32_0 : i32, i32
  }
  func.func @transform_2(%arg0: i32) -> (i32, i32) {
    %c0_i32 = arith.constant 0 : i32
    %c0_i32_0 = arith.constant 0 : i32
    %c0_i32_1 = arith.constant 0 : i32
    return %c0_i32, %c0_i32_0 : i32, i32
  }
  func.func @transform_3(%arg0: i32) -> (i32, i32) {
    %c0_i32 = arith.constant 0 : i32
    %c0_i32_0 = arith.constant 0 : i32
    return %arg0, %c0_i32 : i32, i32
  }
}

</mosaic_0001>

<bundles_post_ra>
// kernel: tpu_custom_call.1
= control target key start
LH: loop header
LB: loop body
LE: loop exit
PB: predicated region body
PF: predicated region fallthrough
CT: control target
= control target key end

     0   :  { %8 = vsyncpa [#allocation4], 0  ;;  %s657_s0 = inlined_call_operand.hbm [shape: f32[8,33], index: 0, kind: input, shape index: {}]   ;;  %s658_s1 = inlined_call_operand.hbm [shape: f32[128,128], index: 1, kind: input, shape index: {}]   ;;  %s659_s2 = inlined_call_operand.hbm [shape: f32[128,128], index: 2, kind: input, shape index: {}]   ;;  %s660_s3 = inlined_call_operand.hbm [shape: f32[8,128], index: 3, kind: output, shape index: {}]  }
   0x1   :  { %9 = vsyncpa [#allocation7], 0 }
   0x2   :  { %10 = vsyncpa [#allocation5], 0  ;;  %s542_s12 = smov [#allocation6]   ;;  %s448_s16 = scalar_lea.hbm %s658_s1, 2048 }
   0x3   :  { %s26_s13 = sshll.u32 %s542_s12, 4  ;;  %p449_p0 = scmp.ne.s32.totalorder %s658_s1, %s448_s16  ;;  %s27_s13 = int_to_ptr.vmem [resolvable:$true] %s26_s13 }
   0x4   :  { %p452_p1 = scmp.lt.u32.totalorder %s448_s16, %s658_s1 }
   0x6   :  { %p454_p2 = pnand %p452_p1, %p449_p0 }
   0x8   :  { %457 = shalt.err (!%p454_p2)
}
   0x9   :  { %s458_s21 = scalar_lea.vmem %s27_s13, 2048  ;;  %p463_p4 = scmp.lt.s32.totalorder %s27_s13, %s27_s13 }
   0xa   :  { %p459_p3 = scmp.ne.s32.totalorder %s27_s13, %s458_s21  ;;  %p464_p5 = scmp.lt.s32.totalorder %s458_s21, %s458_s21 }
   0xc   :  { %p465_p6 = por %p464_p5, %p463_p4 }
   0xe   :  { %p466_p7 = pnand %p465_p6, %p459_p3 }
  0x10   :  { %469 = shalt.err (!%p466_p7)
}
  0x11   :  { %s543_s22 = smov 128   ;;  %s544_s23 = smov 8  }
  0x12   :  { %32 = dma.hbm_to_vmem [thread:$0]  %s658_s1, 2048, %s27_s13, [#allocation7], %s543_s22, %s543_s22, %s544_s23  }
  0x13   :  { %s545_s26 = smov [#allocation3]   ;;  %s546_s28 = smov [#allocation8]  }
  0x14   :  { %s17_s27 = sshll.u32 %s545_s26, 4  ;;  %s38_s29 = sshll.u32 %s546_s28, 4  ;;  %s18_s27 = int_to_ptr.vmem [resolvable:$true] %s17_s27  ;;  %s39_s29 = int_to_ptr.vmem [resolvable:$true] %s38_s29 }
  0x15   :  { %s470_s5 = scalar_lea.hbm %s657_s0, 128 }
  0x16   :  { %p471_p8 = scmp.ne.s32.totalorder %s657_s0, %s470_s5  ;;  %p474_p9 = scmp.lt.u32.totalorder %s470_s5, %s657_s0 }
  0x18   :  { %p476_p10 = pnand %p474_p9, %p471_p8 }
  0x1a   :  { %479 = shalt.err (!%p476_p10)
}
  0x1b   :  { %s480_s1 = scalar_lea.vmem %s18_s27, 128  ;;  %p485_p12 = scmp.lt.s32.totalorder %s18_s27, %s18_s27 }
  0x1c   :  { %p481_p11 = scmp.ne.s32.totalorder %s18_s27, %s480_s1  ;;  %p486_p13 = scmp.lt.s32.totalorder %s480_s1, %s480_s1 }
  0x1e   :  { %p487_p0 = por %p486_p13, %p485_p12 }
  0x20   :  { %p488_p1 = pnand %p487_p0, %p481_p11 }
  0x22   :  { %491 = shalt.err (!%p488_p1)
}
  0x23   :  { %20 = dma.hbm_to_vmem [thread:$0]  %s657_s0, 128, %s18_s27, [#allocation4]  }
  0x24   :  { %s492_s14 = scalar_lea.hbm %s659_s2, 2048 }
  0x25   :  { %p493_p2 = scmp.ne.s32.totalorder %s659_s2, %s492_s14  ;;  %p496_p3 = scmp.lt.u32.totalorder %s492_s14, %s659_s2 }
  0x27   :  { %p498_p4 = pnand %p496_p3, %p493_p2 }
  0x29   :  { %501 = shalt.err (!%p498_p4)
}
  0x2a   :  { %s502_s19 = scalar_lea.vmem %s39_s29, 2048  ;;  %p507_p6 = scmp.lt.s32.totalorder %s39_s29, %s39_s29 }
  0x2b   :  { %p503_p5 = scmp.ne.s32.totalorder %s39_s29, %s502_s19  ;;  %p508_p7 = scmp.lt.s32.totalorder %s502_s19, %s502_s19 }
  0x2d   :  { %p509_p8 = por %p508_p7, %p507_p6 }
  0x2f   :  { %p510_p9 = pnand %p509_p8, %p503_p5 }
  0x31   :  { %513 = shalt.err (!%p510_p9)
}
  0x32   :  { %44 = dma.hbm_to_vmem [thread:$0]  %s659_s2, 2048, %s39_s29, [#allocation7], %s543_s22, %s543_s22, %s544_s23  }
  0x33   :  { %536 = dma.done.wait [#allocation4], 128  }
  0x34   :  { %537 = vsyncadd [#allocation4], 4294967168 }
  0x35   :  { %538 = dma.done.wait [#allocation7], 4096  }
  0x36   :  { %539 = vsyncadd [#allocation7], 4294963200  ;;  %v547_v0 = vmov 0.0|0.0   ;;  %v548_v1 = vmov 0.0   ;;  %v56_v2 = vlaneseq  ;;  %vm549_vm0 = vmmov 0   ;;  %v63_v5 = vld [vmem:[#allocation6] sm:$0xff] }
  0x37   :  { %389 = vmatprep.subr.bf16.mxu0 %v547_v0  ;;  %55 = vst [vmem:[#allocation2] sm:$0xff] %v548_v1  ;;  %413 = vmatprep.subr.bf16.mxu1 %v547_v0  ;;  %v550_v3 = vmov 0   ;;  %v64_v6 = vld [vmem:[#allocation6 + $0x8] sm:$0xff]  ;;  %v65_v7 = vld [vmem:[#allocation6 + $0x10] sm:$0xff]  ;;  %v66_v9 = vld [vmem:[#allocation6 + $0x18] sm:$0xff]  ;;  %vm60_vm2 = vcmask 269312  }
  0x38   :  { %351 = vmatprep.mubr.msk.f32.mxu0 %vm549_vm0, %v548_v1  ;;  %447 = vset.pattern.permute.xlu0 %v550_v3  ;;  %v616_v4 = vand.u32 127, %v56_v2  ;;  %v390_v8 = vpack.c.bf16 %v64_v6, %v63_v5  ;;  %v393_v10 = vpack.c.bf16 %v66_v9, %v65_v7  ;;  %v67_v11 = vld [vmem:[#allocation6 + $0x20] sm:$0xff]  ;;  %v68_v12 = vld [vmem:[#allocation6 + $0x28] sm:$0xff]  ;;  %v54_v13 = vld [vmem:[#allocation3] sm:$0xff]  ;;  %s551_s2 = smov [#allocation9]  }
  0x39   :  { %386 = vmatprep.mubr.msk.f32.mxu1 %vm549_vm0, %v548_v1  ;;  %v178_v14 = vld [vmem:[#allocation8] sm:$0xff]  ;;  %151 = vperm.xlu0 %447, %v54_v13   ;;  %v179_v16 = vld [vmem:[#allocation8 + $0x8] sm:$0xff]  ;;  %v180_v17 = vld [vmem:[#allocation8 + $0x10] sm:$0xff]  ;;  %v396_v19 = vpack.c.bf16 %v68_v12, %v67_v11  ;;  %s273_s21 = sshll.u32 %s551_s2, 4  ;;  %s274_s21 = int_to_ptr.vmem [resolvable:$true] %s273_s21 }
  0x3a   :  { %391 = vmatpush3.bf16.msra.mxu0 %v390_v8  ;;  %vm58_vm1 = vcmp.eq.s32.totalorder %v616_v4, 0  ;;  %v181_v18 = vld [vmem:[#allocation8 + $0x18] sm:$0xff]  ;;  %v414_v20 = vpack.c.bf16 %v179_v16, %v178_v14  ;;  %v69_v21 = vld [vmem:[#allocation6 + $0x30] sm:$0xff]  ;;  %v182_v24 = vld [vmem:[#allocation8 + $0x20] sm:$0xff]  ;;  %vm154_vm3 = vcmp.ge.s32.totalorder %v616_v4, 16  ;;  %vm155_vm4 = vcmp.lt.s32.totalorder %v616_v4, 32  ;;  %p519_p11 = scmp.lt.s32.totalorder %s274_s21, %s274_s21 }
  0x3b   :  { %392 = vmatprep.subr.bf16.mxu0 %v547_v0  ;;  %v59_v15 = vsel %vm58_vm1, 1.0, %v54_v13  ;;  %v70_v22 = vld [vmem:[#allocation6 + $0x38] sm:$0xff]  ;;  %v417_v23 = vpack.c.bf16 %v181_v18, %v180_v17  ;;  %v183_v25 = vld [vmem:[#allocation8 + $0x28] sm:$0xff]  ;;  %v71_v27 = vld [vmem:[#allocation6 + $0x40] sm:$0xff]  ;;  %vm159_vm6 = vcmp.ge.s32.totalorder %v616_v4, 32  ;;  %vm160_vm7 = vcmp.lt.s32.totalorder %v616_v4, 48 }
  0x3c   :  { %61 = vst.msk [vmem:[#allocation2] sm:$0xff] %vm60_vm2, %v59_v15  ;;  %415 = vmatpush3.bf16.msra.mxu1 %v414_v20  ;;  %v399_v26 = vpack.c.bf16 %v70_v22, %v69_v21  ;;  %v72_v28 = vld [vmem:[#allocation6 + $0x48] sm:$0xff]  ;;  %v420_v29 = vpack.c.bf16 %v183_v25, %v182_v24  ;;  %v184_v30 = vld [vmem:[#allocation8 + $0x30] sm:$0xff]  ;;  %v185_v31 = vld [vmem:[#allocation8 + $0x38] sm:$0xff]  ;;  %vm166_vm9 = vcmp.ge.s32.totalorder %v616_v4, 48  ;;  %vm167_vm10 = vcmp.lt.s32.totalorder %v616_v4, 64 }
  0x3d   :  { %416 = vmatprep.subr.bf16.mxu1 %v547_v0  ;;  %v402_v32 = vpack.c.bf16 %v72_v28, %v71_v27  ;;  %v73_v33 = vld [vmem:[#allocation6 + $0x50] sm:$0xff]  ;;  %v74_v34 = vld [vmem:[#allocation6 + $0x58] sm:$0xff]  ;;  %v423_v35 = vpack.c.bf16 %v185_v31, %v184_v30  ;;  %v186_v36 = vld [vmem:[#allocation8 + $0x40] sm:$0xff]  ;;  %vm173_vm12 = vcmp.ge.s32.totalorder %v616_v4, 64  ;;  %vm174_vm13 = vcmp.lt.s32.totalorder %v616_v4, 80  ;;  %s514_s22 = scalar_lea.vmem %s274_s21, 128 }
  0x3e   :  { %394 = vmatpush3.bf16.msra.mxu0 %v393_v10  ;;  %v187_v37 = vld [vmem:[#allocation8 + $0x48] sm:$0xff]  ;;  %v405_v38 = vpack.c.bf16 %v74_v34, %v73_v33  ;;  %v75_v39 = vld [vmem:[#allocation6 + $0x60] sm:$0xff]  ;;  %v188_v42 = vld [vmem:[#allocation8 + $0x50] sm:$0xff]  ;;  %p515_p10 = scmp.ne.s32.totalorder %s274_s21, %s514_s22  ;;  %p520_p12 = scmp.lt.s32.totalorder %s514_s22, %s514_s22 }
  0x3f   :  { %395 = vmatprep.subr.bf16.mxu0 %v547_v0  ;;  %v76_v40 = vld [vmem:[#allocation6 + $0x68] sm:$0xff]  ;;  %v426_v41 = vpack.c.bf16 %v187_v37, %v186_v36  ;;  %v189_v43 = vld [vmem:[#allocation8 + $0x58] sm:$0xff]  ;;  %v77_v45 = vld [vmem:[#allocation6 + $0x70] sm:$0xff] }
  0x40   :  { %418 = vmatpush3.bf16.msra.mxu1 %v417_v23  ;;  %v408_v44 = vpack.c.bf16 %v76_v40, %v75_v39  ;;  %v78_v46 = vld [vmem:[#allocation6 + $0x78] sm:$0xff]  ;;  %v429_v47 = vpack.c.bf16 %v189_v43, %v188_v42  ;;  %v190_v48 = vld [vmem:[#allocation8 + $0x60] sm:$0xff]  ;;  %v191_v49 = vld [vmem:[#allocation8 + $0x68] sm:$0xff]  ;;  %p521_p13 = por %p520_p12, %p519_p11 }
  0x41   :  { %419 = vmatprep.subr.bf16.mxu1 %v547_v0  ;;  %v411_v50 = vpack.c.bf16 %v78_v46, %v77_v45  ;;  %v432_v51 = vpack.c.bf16 %v191_v49, %v190_v48  ;;  %v192_v53 = vld [vmem:[#allocation8 + $0x70] sm:$0xff]  ;;  %v193_v54 = vld [vmem:[#allocation8 + $0x78] sm:$0xff]  ;;  %vm156_vm5 = vmand %vm154_vm3, %vm155_vm4 }
  0x42   :  { %397 = vmatpush3.bf16.msra.mxu0 %v396_v19  ;;  %v435_v55 = vpack.c.bf16 %v193_v54, %v192_v53  ;;  %vm161_vm8 = vmand %vm159_vm6, %vm160_vm7  ;;  %p522_p0 = pnand %p521_p13, %p515_p10 }
  0x43   :  { %398 = vmatprep.subr.bf16.mxu0 %v547_v0  ;;  %v62_v52 = vld [vmem:[#allocation2] sm:$0xff]  ;;  %vm168_vm11 = vmand %vm166_vm9, %vm167_vm10 }
  0x44   :  { %421 = vmatpush3.bf16.msra.mxu1 %v420_v29  ;;  %vm175_vm14 = vmand %vm173_vm12, %vm174_vm13 }
  0x45   :  { %422 = vmatprep.subr.bf16.mxu1 %v547_v0 }
  0x46   :  { %400 = vmatpush3.bf16.msra.mxu0 %v399_v26 }
  0x47   :  { %401 = vmatprep.subr.bf16.mxu0 %v547_v0 }
  0x48   :  { %424 = vmatpush3.bf16.msra.mxu1 %v423_v35 }
  0x49   :  { %425 = vmatprep.subr.bf16.mxu1 %v547_v0 }
  0x4a   :  { %403 = vmatpush3.bf16.msra.mxu0 %v402_v32 }
  0x4b   :  { %404 = vmatprep.subr.bf16.mxu0 %v547_v0 }
  0x4c   :  { %427 = vmatpush3.bf16.msra.mxu1 %v426_v41 }
  0x4d   :  { %428 = vmatprep.subr.bf16.mxu1 %v547_v0 }
  0x4e   :  { %406 = vmatpush3.bf16.msra.mxu0 %v405_v38 }
  0x4f   :  { %407 = vmatprep.subr.bf16.mxu0 %v547_v0 }
  0x50   :  { %430 = vmatpush3.bf16.msra.mxu1 %v429_v47 }
  0x51   :  { %431 = vmatprep.subr.bf16.mxu1 %v547_v0 }
  0x52   :  { %409 = vmatpush3.bf16.msra.mxu0 %v408_v44 }
  0x53   :  { %410 = vmatprep.subr.bf16.mxu0 %v547_v0 }
  0x54   :  { %433 = vmatpush3.bf16.msra.mxu1 %v432_v51 }
  0x55   :  { %434 = vmatprep.subr.bf16.mxu1 %v547_v0 }
  0x56   :  { %412 = vmatpush3.bf16.msra.mxu0 %v411_v50 }
  0x58   :  { %436 = vmatpush3.bf16.msra.mxu1 %v435_v55 }
  0x59   :  { %352 = vmatmul.mubr.f32.vlgmr.msra.gmra.mrb[0].mxu0 %v62_v52 }
  0xb8   :  { %v152_v56 = vpop.permute.xlu0 %151 }
  0xb9   :  { %v283_v57 = vadd.f32 -0.33, %v152_v56  ;;  %v284_v58 = vadd.f32 -0.66, %v152_v56  ;;  %v158_v60 = vmul.f32 %v152_v56, %v152_v56  ;;  %v157_v61 = vsel %vm156_vm5, %v152_v56, 1.0 }
  0xbb   :  { %v164_v59 = vmax.f32 %v283_v57, 0.0  ;;  %v171_v62 = vmax.f32 %v284_v58, 0.0  ;;  %v162_v0 = vsel %vm161_vm8, %v158_v60, %v157_v61 }
  0xbd   :  { %v165_v63 = vmul.f32 %v164_v59, %v164_v59  ;;  %v172_v1 = vmul.f32 %v171_v62, %v171_v62 }
  0xbf   :  { %v169_v2 = vsel %vm168_vm11, %v165_v63, %v162_v0 }
  0xc0   :  { %v176_v5 = vsel %vm175_vm14, %v172_v1, %v169_v2 }
 0x12c   :  { %v145_v3 = vpop.f32.mrb[0].mxu0 }
 0x12d   :  { %v177_v6 = vmul.f32 %v176_v5, %v145_v3  ;;  %v353_v7 = vpop.f32.mrb[1].mxu0 }
 0x12f   :  { %387 = vmatmul.mubr.f32.vlgmr.msra.gmra.mrb[0].mxu1 %v177_v6 }
 0x202   :  { %v260_v8 = vpop.f32.mrb[0].mxu1 }
 0x203   :  { %v264_v9 = vmax.f32 %v260_v8, 0.0  ;;  %v388_v10 = vpop.f32.mrb[1].mxu1 }
 0x205   :  { %v265_v11 = vsel %vm58_vm1, %v152_v56, %v264_v9 }
 0x206   :  { %266 = vst [vmem:[#allocation9] sm:$0xff] %v265_v11 }
 0x207   :  { %525 = shalt.err (!%p522_p0)
}
 0x208   :  { %s526_s25 = scalar_lea.hbm %s660_s3, 128 }
 0x209   :  { %p527_p1 = scmp.ne.s32.totalorder %s660_s3, %s526_s25  ;;  %p530_p2 = scmp.lt.u32.totalorder %s526_s25, %s660_s3 }
 0x20b   :  { %p532_p3 = pnand %p530_p2, %p527_p1 }
 0x20d   :  { %535 = shalt.err (!%p532_p3)
}
 0x20e   :  { %276 = dma.vmem_to_hbm [thread:$0]  %s274_s21, 128, %s660_s3, [#allocation5]  }
 0x20f   :  { %540 = dma.done.wait [#allocation5], 128  }
 0x210   :  { %541 = vsyncadd [#allocation5], 4294967168 }
 0x211   :  { %280 = vsyncpa [#allocation4], 1 }
 0x212   :  { %281 = vsyncpa [#allocation7], 1 }
 0x213   :  { %282 = vsyncpa [#allocation5], 1 }

</bundles_post_ra>
